<compile_context>
chip_gen: v7x
topology: tpu7x:2x2x1
jax: 0.10.0
libtpu: 0.0.40
codegen_flags: <defaults>
</compile_context>

<pallas_src>
import functools

import jax
import jax.numpy as jnp
from jax.experimental import pallas as pl
from jax.experimental.pallas import tpu as pltpu


def _lane_fold(s):
    """Reduce (TR, TC) -> (TR, 128) per-lane partial sums.

    Uses only 128-aligned static slices + full-width VPU adds: no cross-lane
    XLU reduce, no relayouts, O(log(TC/128)) traced ops."""
    nk = s.shape[1] // 128
    carry = None
    while nk > 1:
        if nk % 2:
            tail = s[:, (nk - 1) * 128:]
            carry = tail if carry is None else carry + tail
            nk -= 1
            s = s[:, : nk * 128]
        half = (nk // 2) * 128
        s = s[:, :half] + s[:, half:]
        nk //= 2
    return s if carry is None else s + carry


def _dice_ce_kernel(img_ref, msk_ref, bce_ref, inter_ref, union_ref,
                    *, use_sigmoid):
    j = pl.program_id(1)  # column (reduction) axis, innermost / "arbitrary"

    @pl.when(j == 0)
    def _init():
        bce_ref[...] = jnp.zeros_like(bce_ref)
        inter_ref[...] = jnp.zeros_like(inter_ref)
        union_ref[...] = jnp.zeros_like(union_ref)

    x = img_ref[...].astype(jnp.float32)   # (TR, TC) logits
    y = msk_ref[...].astype(jnp.float32)   # (TR, TC) targets

    # Numerically stable BCE-with-logits.  For the default sigmoid=False path
    # the -x*y term is intentionally omitted here: its total equals the dice
    # intersection total and is subtracted once in the JAX epilogue.
    bce = jnp.maximum(x, 0.0) + jnp.log1p(jnp.exp(-jnp.abs(x)))
    if use_sigmoid:
        bce = bce - x * y                  # needed: intersection != sum(x*y) here
        xd = jax.nn.sigmoid(x)
        inter = xd * y
        union = xd + y
    else:
        inter = x * y                      # doubles as the BCE -x*y total
        union = x + y                      # single fused union reduction

    # Lane-dense (TR, 128) accumulation straight into the output refs
    # (output blocks are resident across the reduction axis).
    bce_ref[...] += _lane_fold(bce)
    inter_ref[...] += _lane_fold(inter)
    union_ref[...] += _lane_fold(union)


def _pick_tiles(rows, cols, target_bytes=4 << 20):
    """Pick (TR, TC) sized on the f32 working set (~target_bytes per block).

    TC: largest multiple-of-128 divisor of cols such that an 8-row f32 block
        fits the budget.
    TR: largest multiple-of-8 divisor of rows fitting the budget, capped so
        the row ("parallel") grid axis has extent >= 2 whenever rows >= 16
        (keeps both v7x TensorCores busy).
    """
    f32 = 4
    tc = 128
    t = 256
    while t <= cols:
        if cols % t == 0 and 8 * t * f32 <= target_bytes:
            tc = t
        t += 128
    tr_cap = rows if rows < 16 else rows // 2
    tr = 8
    t = 16
    while t <= min(rows, tr_cap):
        if rows % t == 0 and t * tc * f32 <= target_bytes:
            tr = t
        t += 8
    return tr, tc


def dice_ce_loss(image, mask, *, weight_ce=1.0, weight_dice=1.0,
                 eps=1e-5, sigmoid=False):
    """image, mask: (N, C, H, W) arrays (NCHW). Returns scalar f32 loss."""
    N, C, H, W = image.shape
    rows, cols = N * C, H * W

    # Keep native dtypes (bf16 stays bf16) -> half the HBM traffic vs f32 cast.
    x2 = image.reshape(rows, cols)
    y2 = mask.reshape(rows, cols)

    # TODO(synk): pad rows/cols (and mask padded elements out of all sums and
    # both mean denominators) for shapes not aligned to (8, 128).
    assert rows % 8 == 0, "N*C must be a multiple of 8 for this kernel"
    assert cols % 128 == 0, "H*W must be a multiple of 128 for this kernel"

    TR, TC = _pick_tiles(rows, cols)

    # Explicit scoped-VMEM budget: 2 inputs x 2 pipeline buffers x block bytes
    # + lane-dense outputs + margin for in-kernel f32 temporaries.  Clamped to
    # [32 MiB, 48 MiB]: above the v5e 16 MiB default, below v7x's 64 MiB
    # physical VMEM with headroom.
    in_itemsize = max(jnp.dtype(x2.dtype).itemsize, jnp.dtype(y2.dtype).itemsize)
    need = 4 * TR * TC * in_itemsize + 6 * TR * 128 * 4 + (16 << 20)
    vmem_limit = int(min(max(need, 32 << 20), 48 << 20))

    kernel = functools.partial(_dice_ce_kernel, use_sigmoid=bool(sigmoid))

    bce_slab, inter_slab, union_slab = pl.pallas_call(
        kernel,
        out_shape=(
            jax.ShapeDtypeStruct((rows, 128), jnp.float32),  # per-lane BCE partials
            jax.ShapeDtypeStruct((rows, 128), jnp.float32),  # per-lane intersection
            jax.ShapeDtypeStruct((rows, 128), jnp.float32),  # per-lane union
        ),
        grid=(rows // TR, cols // TC),
        in_specs=[
            pl.BlockSpec((TR, TC), lambda i, j: (i, j)),
            pl.BlockSpec((TR, TC), lambda i, j: (i, j)),
        ],
        out_specs=(
            pl.BlockSpec((TR, 128), lambda i, j: (i, 0)),
            pl.BlockSpec((TR, 128), lambda i, j: (i, 0)),
            pl.BlockSpec((TR, 128), lambda i, j: (i, 0)),
        ),
        compiler_params=pltpu.CompilerParams(
            dimension_semantics=("parallel", "arbitrary"),
            vmem_limit_bytes=vmem_limit),
    )(x2, y2)

    # Tiny epilogue in plain JAX (tree reduce over (rows, 128) slabs).
    inter = jnp.sum(inter_slab, axis=1)              # (rows,) dice intersections
    union = jnp.sum(union_slab, axis=1)              # (rows,) dice unions
    bce_sum = jnp.sum(bce_slab)
    if not sigmoid:
        bce_sum = bce_sum - jnp.sum(inter)           # fold the -x*y BCE term once
    ce_mean = bce_sum / float(rows * cols)
    dice = (2.0 * inter + eps) / (union + eps)
    dice_mean = jnp.mean(1.0 - dice)
    return weight_ce * ce_mean + weight_dice * dice_mean


def _reference(image, mask, *, weight_ce=1.0, weight_dice=1.0,
               eps=1e-5, sigmoid=False):
    x = image.astype(jnp.float32)
    y = mask.astype(jnp.float32)
    bce = jnp.maximum(x, 0.0) - x * y + jnp.log1p(jnp.exp(-jnp.abs(x)))
    ce = jnp.mean(bce)
    xd = jax.nn.sigmoid(x) if sigmoid else x
    inter = jnp.sum(xd * y, axis=(2, 3))
    union = jnp.sum(xd, axis=(2, 3)) + jnp.sum(y, axis=(2, 3))
    dice = (2.0 * inter + eps) / (union + eps)
    dloss = jnp.mean(1.0 - dice)
    return weight_ce * ce + weight_dice * dloss


if __name__ == "__main__":
    key = jax.random.PRNGKey(0)
    k1, k2 = jax.random.split(key)
    N, C, H, W = 2, 4, 16, 16
    image = jax.random.normal(k1, (N, C, H, W), dtype=jnp.float32)  # logits
    mask = jax.random.bernoulli(k2, 0.5, (N, C, H, W)).astype(jnp.float32)

    loss = dice_ce_loss(image, mask)
    loss = jax.block_until_ready(loss)

    ref = _reference(image, mask)
    assert jnp.allclose(loss, ref, rtol=1e-5, atol=1e-5), (loss, ref)
    print("KERNEL_OK")
</pallas_src>

<mosaic_0001>
module attributes {stable_mosaic.version = 11 : i64} {
  func.func @_dice_ce_kernel(%arg0: i32, %arg1: i32, %arg2: memref<8x256xf32, #tpu.memory_space<vmem>>, %arg3: memref<8x256xf32, #tpu.memory_space<vmem>>, %arg4: memref<8x128xf32, #tpu.memory_space<vmem>>, %arg5: memref<8x128xf32, #tpu.memory_space<vmem>>, %arg6: memref<8x128xf32, #tpu.memory_space<vmem>>) attributes {dimension_semantics = [#tpu.dimension_semantics<parallel>, #tpu.dimension_semantics<arbitrary>], iteration_bounds = array<i64: 1, 1>, scalar_prefetch = 0 : i64, scratch_operands = 0 : i64, tpu.core_type = #tpu.core_type<tc>, window_params = [{transform_indices = @transform_0, window_bounds = array<i64: 8, 256>}, {transform_indices = @transform_1, window_bounds = array<i64: 8, 256>}, {transform_indices = @transform_2, window_bounds = array<i64: 8, 128>}, {transform_indices = @transform_3, window_bounds = array<i64: 8, 128>}, {transform_indices = @transform_4, window_bounds = array<i64: 8, 128>}]} {
    %c0_i32 = arith.constant 0 : i32
    %0 = arith.cmpi eq, %arg1, %c0_i32 : i32
    %1 = arith.extui %0 : i1 to i32
    %c0_i32_0 = arith.constant 0 : i32
    %2 = arith.cmpi ne, %1, %c0_i32_0 : i32
    scf.if %2 {
      %cst_17 = arith.constant 0.000000e+00 : f32
      %33 = vector.broadcast %cst_17 : f32 to vector<8x128xf32>
      %c0_18 = arith.constant 0 : index
      %c0_19 = arith.constant 0 : index
      %34 = vector.load %arg4[%c0_18, %c0_19] : memref<8x128xf32, #tpu.memory_space<vmem>>, vector<8x128xf32>
      tpu.vector_store %arg4[%c0_18, %c0_19], %33 {strides = array<i32>} : memref<8x128xf32, #tpu.memory_space<vmem>>, vector<8x128xf32>,
      %cst_20 = arith.constant 0.000000e+00 : f32
      %35 = vector.broadcast %cst_20 : f32 to vector<8x128xf32>
      %c0_21 = arith.constant 0 : index
      %c0_22 = arith.constant 0 : index
      %36 = vector.load %arg5[%c0_21, %c0_22] : memref<8x128xf32, #tpu.memory_space<vmem>>, vector<8x128xf32>
      tpu.vector_store %arg5[%c0_21, %c0_22], %35 {strides = array<i32>} : memref<8x128xf32, #tpu.memory_space<vmem>>, vector<8x128xf32>,
      %cst_23 = arith.constant 0.000000e+00 : f32
      %37 = vector.broadcast %cst_23 : f32 to vector<8x128xf32>
      %c0_24 = arith.constant 0 : index
      %c0_25 = arith.constant 0 : index
      %38 = vector.load %arg6[%c0_24, %c0_25] : memref<8x128xf32, #tpu.memory_space<vmem>>, vector<8x128xf32>
      tpu.vector_store %arg6[%c0_24, %c0_25], %37 {strides = array<i32>} : memref<8x128xf32, #tpu.memory_space<vmem>>, vector<8x128xf32>,
    } else {
    }
    %c0 = arith.constant 0 : index
    %c0_1 = arith.constant 0 : index
    %3 = vector.load %arg2[%c0, %c0_1] : memref<8x256xf32, #tpu.memory_space<vmem>>, vector<8x256xf32>
    %c0_2 = arith.constant 0 : index
    %c0_3 = arith.constant 0 : index
    %4 = vector.load %arg3[%c0_2, %c0_3] : memref<8x256xf32, #tpu.memory_space<vmem>>, vector<8x256xf32>
    %cst = arith.constant 0.000000e+00 : f32
    %5 = vector.broadcast %cst : f32 to vector<8x256xf32>
    %6 = arith.maximumf %3, %5 : vector<8x256xf32>
    %7 = math.absf %3 : vector<8x256xf32>
    %cst_4 = arith.constant 0.000000e+00 : f32
    %8 = vector.broadcast %cst_4 : f32 to vector<8x256xf32>
    %9 = arith.subf %8, %7 : vector<8x256xf32>
    %10 = math.exp %9 : vector<8x256xf32>
    %11 = math.log1p %10 : vector<8x256xf32>
    %12 = arith.addf %6, %11 : vector<8x256xf32>
    %13 = arith.mulf %3, %4 : vector<8x256xf32>
    %14 = arith.addf %3, %4 : vector<8x256xf32>
    %c0_5 = arith.constant 0 : index
    %c0_6 = arith.constant 0 : index
    %15 = vector.load %arg4[%c0_5, %c0_6] : memref<8x128xf32, #tpu.memory_space<vmem>>, vector<8x128xf32>
    %16 = vector.extract_strided_slice %12 {offsets = [0, 0], sizes = [8, 128], strides = [1, 1]} : vector<8x256xf32> to vector<8x128xf32>
    %17 = vector.extract_strided_slice %12 {offsets = [0, 128], sizes = [8, 128], strides = [1, 1]} : vector<8x256xf32> to vector<8x128xf32>
    %18 = arith.addf %16, %17 : vector<8x128xf32>
    %19 = arith.addf %15, %18 : vector<8x128xf32>
    %c0_7 = arith.constant 0 : index
    %c0_8 = arith.constant 0 : index
    %20 = vector.load %arg4[%c0_7, %c0_8] : memref<8x128xf32, #tpu.memory_space<vmem>>, vector<8x128xf32>
    tpu.vector_store %arg4[%c0_7, %c0_8], %19 {strides = array<i32>} : memref<8x128xf32, #tpu.memory_space<vmem>>, vector<8x128xf32>,
    %c0_9 = arith.constant 0 : index
    %c0_10 = arith.constant 0 : index
    %21 = vector.load %arg5[%c0_9, %c0_10] : memref<8x128xf32, #tpu.memory_space<vmem>>, vector<8x128xf32>
    %22 = vector.extract_strided_slice %13 {offsets = [0, 0], sizes = [8, 128], strides = [1, 1]} : vector<8x256xf32> to vector<8x128xf32>
    %23 = vector.extract_strided_slice %13 {offsets = [0, 128], sizes = [8, 128], strides = [1, 1]} : vector<8x256xf32> to vector<8x128xf32>
    %24 = arith.addf %22, %23 : vector<8x128xf32>
    %25 = arith.addf %21, %24 : vector<8x128xf32>
    %c0_11 = arith.constant 0 : index
    %c0_12 = arith.constant 0 : index
    %26 = vector.load %arg5[%c0_11, %c0_12] : memref<8x128xf32, #tpu.memory_space<vmem>>, vector<8x128xf32>
    tpu.vector_store %arg5[%c0_11, %c0_12], %25 {strides = array<i32>} : memref<8x128xf32, #tpu.memory_space<vmem>>, vector<8x128xf32>,
    %c0_13 = arith.constant 0 : index
    %c0_14 = arith.constant 0 : index
    %27 = vector.load %arg6[%c0_13, %c0_14] : memref<8x128xf32, #tpu.memory_space<vmem>>, vector<8x128xf32>
    %28 = vector.extract_strided_slice %14 {offsets = [0, 0], sizes = [8, 128], strides = [1, 1]} : vector<8x256xf32> to vector<8x128xf32>
    %29 = vector.extract_strided_slice %14 {offsets = [0, 128], sizes = [8, 128], strides = [1, 1]} : vector<8x256xf32> to vector<8x128xf32>
    %30 = arith.addf %28, %29 : vector<8x128xf32>
    %31 = arith.addf %27, %30 : vector<8x128xf32>
    %c0_15 = arith.constant 0 : index
    %c0_16 = arith.constant 0 : index
    %32 = vector.load %arg6[%c0_15, %c0_16] : memref<8x128xf32, #tpu.memory_space<vmem>>, vector<8x128xf32>
    tpu.vector_store %arg6[%c0_15, %c0_16], %31 {strides = array<i32>} : memref<8x128xf32, #tpu.memory_space<vmem>>, vector<8x128xf32>,
    return
  }
  func.func @transform_0(%arg0: i32, %arg1: i32) -> (i32, i32) {
    %c0_i32 = arith.constant 0 : i32
    return %arg0, %arg1 : i32, i32
  }
  func.func @transform_1(%arg0: i32, %arg1: i32) -> (i32, i32) {
    %c0_i32 = arith.constant 0 : i32
    return %arg0, %arg1 : i32, i32
  }
  func.func @transform_2(%arg0: i32, %arg1: i32) -> (i32, i32) {
    %c0_i32 = arith.constant 0 : i32
    %c0_i32_0 = arith.constant 0 : i32
    return %arg0, %c0_i32 : i32, i32
  }
  func.func @transform_3(%arg0: i32, %arg1: i32) -> (i32, i32) {
    %c0_i32 = arith.constant 0 : i32
    %c0_i32_0 = arith.constant 0 : i32
    return %arg0, %c0_i32 : i32, i32
  }
  func.func @transform_4(%arg0: i32, %arg1: i32) -> (i32, i32) {
    %c0_i32 = arith.constant 0 : i32
    %c0_i32_0 = arith.constant 0 : i32
    return %arg0, %c0_i32 : i32, i32
  }
}

</mosaic_0001>

<bundles_post_ra>
// kernel: tpu_custom_call.1
= control target key start
LH: loop header
LB: loop body
LE: loop exit
PB: predicated region body
PF: predicated region fallthrough
CT: control target
= control target key end

     0   :  { %10 = vsyncpa [#allocation3], 0  ;;  %s381_s0 = inlined_call_operand.hbm [shape: f32[8,256], index: 0, kind: input, shape index: {}]   ;;  %s382_s1 = inlined_call_operand.hbm [shape: f32[8,256], index: 1, kind: input, shape index: {}]   ;;  %s383_s2 = inlined_call_operand.hbm [shape: f32[8,128], index: 2, kind: output, shape index: {0}]   ;;  %s384_s3 = inlined_call_operand.hbm [shape: f32[8,128], index: 3, kind: output, shape index: {1}]   ;;  %s385_s4 = inlined_call_operand.hbm [shape: f32[8,128], index: 4, kind: output, shape index: {2}]  }
   0x1   :  { %11 = vsyncpa [#allocation6], 0 }
   0x2   :  { %12 = vsyncpa [#allocation4], 0 }
   0x3   :  { %13 = vsyncpa [#allocation9], 0  ;;  %s272_s15 = smov [#allocation2]   ;;  %s273_s17 = smov [#allocation5]  }
   0x4   :  { %s20_s16 = sshll.u32 %s272_s15, 4  ;;  %s30_s18 = sshll.u32 %s273_s17, 4  ;;  %s21_s16 = int_to_ptr.vmem [resolvable:$true] %s20_s16  ;;  %s31_s18 = int_to_ptr.vmem [resolvable:$true] %s30_s18 }
   0x5   :  { %s154_s21 = scalar_lea.hbm %s381_s0, 256 }
   0x6   :  { %p155_p0 = scmp.ne.s32.totalorder %s381_s0, %s154_s21  ;;  %p158_p1 = scmp.lt.u32.totalorder %s154_s21, %s381_s0 }
   0x8   :  { %p160_p2 = pnand %p158_p1, %p155_p0 }
   0xa   :  { %163 = shalt.err (!%p160_p2)
}
   0xb   :  { %s164_s26 = scalar_lea.vmem %s21_s16, 256  ;;  %p169_p4 = scmp.lt.s32.totalorder %s21_s16, %s21_s16 }
   0xc   :  { %p165_p3 = scmp.ne.s32.totalorder %s21_s16, %s164_s26  ;;  %p170_p5 = scmp.lt.s32.totalorder %s164_s26, %s164_s26 }
   0xe   :  { %p171_p6 = por %p170_p5, %p169_p4 }
  0x10   :  { %p172_p7 = pnand %p171_p6, %p165_p3 }
  0x12   :  { %175 = shalt.err (!%p172_p7)
}
  0x13   :  { %23 = dma.hbm_to_vmem [thread:$0]  %s381_s0, 256, %s21_s16, [#allocation3]  }
  0x14   :  { %s176_s5 = scalar_lea.hbm %s382_s1, 256 }
  0x15   :  { %p177_p8 = scmp.ne.s32.totalorder %s382_s1, %s176_s5  ;;  %p180_p9 = scmp.lt.u32.totalorder %s176_s5, %s382_s1 }
  0x17   :  { %p182_p10 = pnand %p180_p9, %p177_p8 }
  0x19   :  { %185 = shalt.err (!%p182_p10)
}
  0x1a   :  { %s186_s10 = scalar_lea.vmem %s31_s18, 256  ;;  %p191_p12 = scmp.lt.s32.totalorder %s31_s18, %s31_s18 }
  0x1b   :  { %p187_p11 = scmp.ne.s32.totalorder %s31_s18, %s186_s10  ;;  %p192_p13 = scmp.lt.s32.totalorder %s186_s10, %s186_s10 }
  0x1d   :  { %p193_p0 = por %p192_p13, %p191_p12 }
  0x1f   :  { %p194_p1 = pnand %p193_p0, %p187_p11 }
  0x21   :  { %197 = shalt.err (!%p194_p1)
}
  0x22   :  { %33 = dma.hbm_to_vmem [thread:$0]  %s382_s1, 256, %s31_s18, [#allocation6]  }
  0x23   :  { %264 = dma.done.wait [#allocation3], 256  }
  0x24   :  { %265 = vsyncadd [#allocation3], 4294967040 }
  0x25   :  { %266 = dma.done.wait [#allocation6], 256  }
  0x26   :  { %267 = vsyncadd [#allocation6], 4294967040  ;;  %v326_v0 = vld [vmem:[#allocation2] sm:$0xff]  ;;  %v328_v1 = vld [vmem:[#allocation2 + $0x8] sm:$0xff]  ;;  %s274_s1 = smov [#allocation8]   ;;  %s275_s13 = smov [#allocation10]  }
  0x27   :  { %v49_v2 = vld [vmem:[#allocation5] sm:$0xff]  ;;  %v50_v3 = vld [vmem:[#allocation5 + $0x8] sm:$0xff]  ;;  %v53_v4 = vand.u32 2147483647, %v326_v0  ;;  %v54_v5 = vand.u32 2147483647, %v328_v1 }
  0x28   :  { %v81_v6 = vmul.f32 %v49_v2, %v326_v0  ;;  %v82_v7 = vmul.f32 %v50_v3, %v328_v1  ;;  %v83_v8 = vadd.f32 %v49_v2, %v326_v0  ;;  %v84_v9 = vadd.f32 %v50_v3, %v328_v1  ;;  %s113_s12 = sshll.u32 %s274_s1, 4  ;;  %s123_s14 = sshll.u32 %s275_s13, 4  ;;  %s114_s12 = int_to_ptr.vmem [resolvable:$true] %s113_s12  ;;  %s336_s14 = int_to_ptr.vmem [resolvable:$true] %s123_s14 }
  0x29   :  { %v55_v10 = vsub.f32 0.0, %v53_v4  ;;  %v56_v11 = vsub.f32 0.0, %v54_v5  ;;  %s198_s15 = scalar_lea.vmem %s114_s12, 128  ;;  %p203_p3 = scmp.lt.s32.totalorder %s114_s12, %s114_s12 }
  0x2a   :  { %v90_v12 = vadd.f32 %v82_v7, %v81_v6  ;;  %v94_v13 = vadd.f32 %v84_v9, %v83_v8  ;;  %p199_p2 = scmp.ne.s32.totalorder %s114_s12, %s198_s15  ;;  %p204_p4 = scmp.lt.s32.totalorder %s198_s15, %s198_s15 }
  0x2b   :  { %v57_v14 = vmul.f32 1.442695, %v55_v10  ;;  %v59_v15 = vmul.f32 1.442695, %v56_v11 }
  0x2c   :  { %92 = vst [vmem:[#allocation8] sm:$0xff] %v90_v12  ;;  %96 = vst [vmem:[#allocation10] sm:$0xff] %v94_v13  ;;  %p205_p5 = por %p204_p4, %p203_p3 }
  0x2d   :  { %146 = vpow2.f32 %v57_v14 }
  0x2e   :  { %148 = vpow2.f32 %v59_v15  ;;  %p206_p6 = pnand %p205_p5, %p199_p2 }
  0x30   :  { %209 = shalt.err (!%p206_p6)
}
  0x31   :  { %s210_s18 = scalar_lea.hbm %s384_s3, 128 }
  0x32   :  { %p211_p7 = scmp.ne.s32.totalorder %s384_s3, %s210_s18  ;;  %p214_p8 = scmp.lt.u32.totalorder %s210_s18, %s384_s3 }
  0x34   :  { %p216_p9 = pnand %p214_p8, %p211_p7 }
  0x36   :  { %219 = shalt.err (!%p216_p9)
}
  0x37   :  { %116 = dma.vmem_to_hbm [thread:$0]  %s114_s12, 128, %s384_s3, [#allocation9]  }
  0x38   :  { %s220_s25 = scalar_lea.vmem %s336_s14, 128  ;;  %p225_p11 = scmp.lt.s32.totalorder %s336_s14, %s336_s14 }
  0x39   :  { %p221_p10 = scmp.ne.s32.totalorder %s336_s14, %s220_s25  ;;  %p226_p12 = scmp.lt.s32.totalorder %s220_s25, %s220_s25 }
  0x3b   :  { %p227_p13 = por %p226_p12, %p225_p11 }
  0x3d   :  { %p228_p0 = pnand %p227_p13, %p221_p10 }
  0x3f   :  { %231 = shalt.err (!%p228_p0)
}
  0x40   :  { %s232_s28 = scalar_lea.hbm %s385_s4, 128 }
  0x41   :  { %p233_p1 = scmp.ne.s32.totalorder %s385_s4, %s232_s28  ;;  %p236_p2 = scmp.lt.u32.totalorder %s232_s28, %s385_s4 }
  0x43   :  { %p238_p3 = pnand %p236_p2, %p233_p1 }
  0x45   :  { %241 = shalt.err (!%p238_p3)
}
  0x46   :  { %126 = dma.vmem_to_hbm [thread:$0]  %s336_s14, 128, %s385_s4, [#allocation9]   ;;  %v147_v16 = vpop.eup %146  ;;  %v51_v28 = vmax.f32 %v326_v0, 0.0  ;;  %v52_v31 = vmax.f32 %v328_v1, 0.0 }
  0x47   :  { %v149_v17 = vpop.eup %148  ;;  %v61_v18 = vadd.f32 1.0, %v147_v16  ;;  %v64_v20 = vmul.f32 -0.5, %v147_v16  ;;  %v67_v23 = vand.u32 2147483647, %v147_v16  ;;  %s276_s4 = smov [#allocation7]  }
  0x48   :  { %v70_v19 = vadd.f32 1.0, %v149_v17  ;;  %v73_v21 = vmul.f32 -0.5, %v149_v17  ;;  %v76_v25 = vand.u32 2147483647, %v149_v17  ;;  %s103_s8 = sshll.u32 %s276_s4, 4  ;;  %s104_s8 = int_to_ptr.vmem [resolvable:$true] %s103_s8 }
  0x49   :  { %150 = vlog2.f32 %v61_v18  ;;  %v65_v22 = vadd.f32 1.0, %v64_v20  ;;  %vm68_vm0 = vcmp.lt.f32.partialorder %v67_v23, 0.0004427343  ;;  %s242_s9 = scalar_lea.vmem %s104_s8, 128  ;;  %p247_p5 = scmp.lt.s32.totalorder %s104_s8, %s104_s8 }
  0x4a   :  { %152 = vlog2.f32 %v70_v19  ;;  %v74_v24 = vadd.f32 1.0, %v73_v21  ;;  %vm77_vm1 = vcmp.lt.f32.partialorder %v76_v25, 0.0004427343  ;;  %p243_p4 = scmp.ne.s32.totalorder %s104_s8, %s242_s9  ;;  %p248_p6 = scmp.lt.s32.totalorder %s242_s9, %s242_s9 }
  0x4b   :  { %v66_v26 = vmul.f32 %v147_v16, %v65_v22 }
  0x4c   :  { %v75_v29 = vmul.f32 %v149_v17, %v74_v24  ;;  %p249_p7 = por %p248_p6, %p247_p5 }
  0x4e   :  { %p250_p8 = pnand %p249_p7, %p243_p4 }
  0x53   :  { %v151_v27 = vpop.eup %150 }
  0x54   :  { %v153_v30 = vpop.eup %152  ;;  %v63_v32 = vmul.f32 0.6931472, %v151_v27 }
  0x55   :  { %v72_v33 = vmul.f32 0.6931472, %v153_v30 }
  0x56   :  { %v69_v34 = vsel %vm68_vm0, %v66_v26, %v63_v32 }
  0x57   :  { %v78_v35 = vsel %vm77_vm1, %v75_v29, %v72_v33  ;;  %v79_v36 = vadd.f32 %v69_v34, %v51_v28 }
  0x58   :  { %v80_v37 = vadd.f32 %v78_v35, %v52_v31 }
  0x5a   :  { %v86_v38 = vadd.f32 %v80_v37, %v79_v36 }
  0x5c   :  { %88 = vst [vmem:[#allocation7] sm:$0xff] %v86_v38 }
  0x5d   :  { %253 = shalt.err (!%p250_p8)
}
  0x5e   :  { %s254_s11 = scalar_lea.hbm %s383_s2, 128 }
  0x5f   :  { %p255_p9 = scmp.ne.s32.totalorder %s383_s2, %s254_s11  ;;  %p258_p10 = scmp.lt.u32.totalorder %s254_s11, %s383_s2 }
  0x61   :  { %p260_p11 = pnand %p258_p10, %p255_p9 }
  0x63   :  { %263 = shalt.err (!%p260_p11)
}
  0x64   :  { %106 = dma.vmem_to_hbm [thread:$0]  %s104_s8, 128, %s383_s2, [#allocation4]  }
  0x65   :  { %268 = dma.done.wait [#allocation4], 128  }
  0x66   :  { %269 = vsyncadd [#allocation4], 4294967168 }
  0x67   :  { %270 = dma.done.wait [#allocation9], 256  }
  0x68   :  { %271 = vsyncadd [#allocation9], 4294967040 }
  0x69   :  { %136 = vsyncpa [#allocation3], 1 }
  0x6a   :  { %137 = vsyncpa [#allocation6], 1 }
  0x6b   :  { %138 = vsyncpa [#allocation4], 1 }
  0x6c   :  { %139 = vsyncpa [#allocation9], 1 }

</bundles_post_ra>
